<compile_context>
chip_gen: v5e
topology: v5e:2x2
jax: 0.10.0
libtpu: 0.0.40
codegen_flags: <defaults>
</compile_context>

<pallas_src>
import functools

import jax
import jax.numpy as jnp
from jax.experimental import pallas as pl
from jax.experimental.pallas import tpu as pltpu

HEAD_STRIDE = 1


def _round_up(x, m):
    return ((x + m - 1) // m) * m


def _pick_tile(n, cap):
    t = cap
    while t >= 8:
        if n % t == 0:
            return t
        t //= 2
    return n


# ----------------------------------------------------------------------------
# Pallas matmul (+bias, +ReLU) with full-K / full-N blocks (K, N are small here).
# Used for 1x1x1 convs, the Cin=1 stem conv and stride-2 downsample convs (im2col).
# ----------------------------------------------------------------------------
def _mm_bias_kernel(a_ref, b_ref, bias_ref, o_ref, *, relu):
    acc = jnp.dot(a_ref[...], b_ref[...], preferred_element_type=jnp.float32)
    acc = acc + bias_ref[...]
    if relu:
        acc = jnp.maximum(acc, 0.0)
    o_ref[...] = acc.astype(o_ref.dtype)


def pallas_matmul_bias(a, b, bias=None, relu=False, out_dtype=jnp.bfloat16):
    M, K = a.shape
    K2, N = b.shape
    assert K == K2
    if bias is None:
        bias = jnp.zeros((N,), jnp.float32)
    a = a.astype(jnp.bfloat16)
    b = b.astype(jnp.bfloat16)
    bias2 = bias.reshape(1, N).astype(jnp.float32)

    tm = _pick_tile(M, 256)
    Mp = M
    if tm == M and M > 4096:          # generic fallback (not hit at these shapes)
        tm = 256
        Mp = _round_up(M, tm)
    if Mp != M:
        a = jnp.zeros((Mp, K), a.dtype).at[:M].set(a)

    out = pl.pallas_call(
        functools.partial(_mm_bias_kernel, relu=relu),
        out_shape=jax.ShapeDtypeStruct((Mp, N), out_dtype),
        grid=(Mp // tm,),
        in_specs=[pl.BlockSpec((tm, K), lambda i: (i, 0)),
                  pl.BlockSpec((K, N), lambda i: (0, 0)),
                  pl.BlockSpec((1, N), lambda i: (0, 0))],
        out_specs=pl.BlockSpec((tm, N), lambda i: (i, 0)),
        compiler_params=pltpu.CompilerParams(
            dimension_semantics=("parallel",)),
    )(a, b, bias2)
    if Mp != M:
        out = out[:M]
    return out


# ----------------------------------------------------------------------------
# 3x3x3 stride-1 "same" conv: direct 27-tap Pallas kernel (no im2col in HBM).
# Per grid step (n, d): reads padded depth-slices d, d+1, d+2 (flattened over H*W)
# and accumulates 27 shifted-slice matmuls into an f32 accumulator.
# ----------------------------------------------------------------------------
def _conv3x3x3_kernel(x0_ref, x1_ref, x2_ref, w_ref, b_ref, o_ref, *,
                      Wp, M_step, relu):
    x_refs = (x0_ref, x1_ref, x2_ref)
    cout = o_ref.shape[-1]
    acc = jnp.broadcast_to(b_ref[...], (M_step, cout)).astype(jnp.float32)
    for dz in range(3):
        for dy in range(3):
            for dx in range(3):
                t = (dz * 3 + dy) * 3 + dx
                a = x_refs[dz][0, 0, pl.ds(dy * Wp + dx, M_step), :]
                acc = acc + jnp.dot(a, w_ref[t],
                                    preferred_element_type=jnp.float32)
    if relu:
        acc = jnp.maximum(acc, 0.0)
    o_ref[0, 0] = acc.astype(o_ref.dtype)


@functools.partial(jax.jit, static_argnames=("relu",))
def conv3x3x3_s1(x, w, b=None, relu=False):
    # x: (N, D, H, W, Cin) ; w: (3, 3, 3, Cin, Cout)
    N, D, H, W, Cin = x.shape
    Cout = w.shape[-1]
    if b is None:
        b = jnp.zeros((Cout,), jnp.float32)
    Hp, Wp = H + 2, W + 2
    HWp = Hp * Wp
    M_step = H * Wp - 2      # covers every valid output row of one depth slice

    xp = jnp.pad(x.astype(jnp.bfloat16),
                 ((0, 0), (1, 1), (1, 1), (1, 1), (0, 0)))
    xf = xp.reshape(N, D + 2, HWp, Cin)
    wr = w.reshape(27, Cin, Cout).astype(jnp.bfloat16)
    br = b.reshape(1, Cout).astype(jnp.float32)

    in_specs = [pl.BlockSpec((1, 1, HWp, Cin),
                             lambda n, d, dz=dz: (n, d + dz, 0, 0))
                for dz in range(3)]
    in_specs += [pl.BlockSpec((27, Cin, Cout), lambda n, d: (0, 0, 0)),
                 pl.BlockSpec((1, Cout), lambda n, d: (0, 0))]

    out = pl.pallas_call(
        functools.partial(_conv3x3x3_kernel, Wp=Wp, M_step=M_step, relu=relu),
        out_shape=jax.ShapeDtypeStruct((N, D, M_step, Cout), jnp.bfloat16),
        grid=(N, D),
        in_specs=in_specs,
        out_specs=pl.BlockSpec((1, 1, M_step, Cout), lambda n, d: (n, d, 0, 0)),
        compiler_params=pltpu.CompilerParams(
            dimension_semantics=("parallel", "parallel")),
    )(xf, xf, xf, wr, br)

    # drop the garbage boundary columns: pad 2 rows, reshape (H, Wp), keep :W
    y = jnp.pad(out, ((0, 0), (0, 0), (0, H * Wp - M_step), (0, 0)))
    y = y.reshape(N, D, H, Wp, Cout)[:, :, :, :W, :]
    return y


# ----------------------------------------------------------------------------
# GroupNorm(8) + ReLU: S-tiled, lane-dense (spatial folded into lanes for C<128).
# Pass 1: per-(n, folded-channel) sum / sumsq accumulated over the S grid axis.
# Pass 2: y = x * scale + shift (+ReLU), elementwise, fully tiled.
# ----------------------------------------------------------------------------
def _gn_stats_kernel(x_ref, sum_ref, sq_ref):
    @pl.when(pl.program_id(1) == 0)
    def _():
        sum_ref[...] = jnp.zeros_like(sum_ref)
        sq_ref[...] = jnp.zeros_like(sq_ref)
    x = x_ref[0].astype(jnp.float32)                 # (ts, Cf)
    sum_ref[0] += jnp.sum(x, axis=0, keepdims=True)
    sq_ref[0] += jnp.sum(x * x, axis=0, keepdims=True)


def _gn_apply_kernel(x_ref, scale_ref, shift_ref, o_ref, *, relu):
    y = x_ref[0].astype(jnp.float32) * scale_ref[0] + shift_ref[0]
    if relu:
        y = jnp.maximum(y, 0.0)
    o_ref[0] = y.astype(o_ref.dtype)


@functools.partial(jax.jit, static_argnames=("num_groups", "eps", "relu"))
def group_norm_relu(x, gamma, beta, num_groups=8, eps=1e-5, relu=True):
    N, D, H, W, C = x.shape
    S = D * H * W
    k = max(1, 128 // C)
    if S % k != 0:
        k = 1
    Sf, Cf = S // k, C * k
    ts = _pick_tile(Sf, 1024)
    grid = (N, Sf // ts)
    xf = x.reshape(N, Sf, Cf)

    sums, sqs = pl.pallas_call(
        _gn_stats_kernel,
        out_shape=(jax.ShapeDtypeStruct((N, 1, Cf), jnp.float32),
                   jax.ShapeDtypeStruct((N, 1, Cf), jnp.float32)),
        grid=grid,
        in_specs=[pl.BlockSpec((1, ts, Cf), lambda n, s: (n, s, 0))],
        out_specs=(pl.BlockSpec((1, 1, Cf), lambda n, s: (n, 0, 0)),
                   pl.BlockSpec((1, 1, Cf), lambda n, s: (n, 0, 0))),
        compiler_params=pltpu.CompilerParams(
            dimension_semantics=("parallel", "arbitrary")),
    )(xf)

    Cg = C // num_groups
    ch_sum = sums.reshape(N, k, C).sum(axis=1)               # (N, C)
    ch_sq = sqs.reshape(N, k, C).sum(axis=1)
    g_sum = ch_sum.reshape(N, num_groups, Cg).sum(-1)        # (N, G)
    g_sq = ch_sq.reshape(N, num_groups, Cg).sum(-1)
    cnt = float(S * Cg)
    mean = g_sum / cnt
    var = jnp.maximum(g_sq / cnt - mean * mean, 0.0)
    inv = jax.lax.rsqrt(var + eps)
    scale_c = gamma[None, :] * jnp.repeat(inv, Cg, axis=1)   # (N, C)
    shift_c = beta[None, :] - jnp.repeat(mean, Cg, axis=1) * scale_c
    scale_f = jnp.tile(scale_c, (1, k)).reshape(N, 1, Cf).astype(jnp.float32)
    shift_f = jnp.tile(shift_c, (1, k)).reshape(N, 1, Cf).astype(jnp.float32)

    out = pl.pallas_call(
        functools.partial(_gn_apply_kernel, relu=relu),
        out_shape=jax.ShapeDtypeStruct((N, Sf, Cf), x.dtype),
        grid=grid,
        in_specs=[pl.BlockSpec((1, ts, Cf), lambda n, s: (n, s, 0)),
                  pl.BlockSpec((1, 1, Cf), lambda n, s: (n, 0, 0)),
                  pl.BlockSpec((1, 1, Cf), lambda n, s: (n, 0, 0))],
        out_specs=pl.BlockSpec((1, ts, Cf), lambda n, s: (n, s, 0)),
        compiler_params=pltpu.CompilerParams(
            dimension_semantics=("parallel", "parallel")),
    )(xf, scale_f, shift_f)
    return out.reshape(N, D, H, W, C)


# ----------------------------------------------------------------------------
# Fallback conv (im2col + Pallas matmul): only Cin=1 stem conv and stride-2 convs.
# ----------------------------------------------------------------------------
@functools.partial(jax.jit, static_argnames=("stride", "padding", "relu"))
def conv3d_im2col(x, w, b=None, stride=1, padding=None, relu=False):
    N, D, H, W, Cin = x.shape
    kd, kh, kw, _, Cout = w.shape
    if padding is None:
        padding = (kd - 1) // 2
    xp = jnp.pad(x.astype(jnp.bfloat16),
                 ((0, 0), (padding, padding), (padding, padding),
                  (padding, padding), (0, 0)))
    Do = (D + 2 * padding - kd) // stride + 1
    Ho = (H + 2 * padding - kh) // stride + 1
    Wo = (W + 2 * padding - kw) // stride + 1
    cols = []
    for a in range(kd):
        for c in range(kh):
            for e in range(kw):
                cols.append(xp[:, a:a + stride * (Do - 1) + 1:stride,
                               c:c + stride * (Ho - 1) + 1:stride,
                               e:e + stride * (Wo - 1) + 1:stride, :])
    patches = jnp.concatenate(cols, axis=-1)
    A = patches.reshape(N * Do * Ho * Wo, kd * kh * kw * Cin)
    Wm = w.reshape(kd * kh * kw * Cin, Cout)
    y = pallas_matmul_bias(A, Wm, b, relu=relu)
    return y.reshape(N, Do, Ho, Wo, Cout)


@functools.partial(jax.jit, static_argnames=("relu",))
def conv1x1(x, w, b=None, relu=False):
    N, D, H, W, Cin = x.shape
    Cout = w.shape[-1]
    y = pallas_matmul_bias(x.reshape(N * D * H * W, Cin),
                           w.reshape(Cin, Cout), b, relu=relu)
    return y.reshape(N, D, H, W, Cout)


# ----------------------------------------------------------------------------
# Trilinear x2 upsample, align_corners=False (MONAI SegResNet NONTRAINABLE upsample)
# ----------------------------------------------------------------------------
def _upsample2_axis(x, axis):
    L = x.shape[axis]
    idx = jnp.arange(L)
    prev = jnp.take(x, jnp.maximum(idx - 1, 0), axis=axis)
    nxt = jnp.take(x, jnp.minimum(idx + 1, L - 1), axis=axis)
    even = 0.75 * x + 0.25 * prev
    odd = 0.75 * x + 0.25 * nxt
    y = jnp.stack([even, odd], axis=axis + 1)
    shape = list(x.shape)
    shape[axis] = 2 * L
    return y.reshape(shape)


def upsample2_trilinear(x):
    for axis in (1, 2, 3):  # D, H, W
        x = _upsample2_axis(x, axis)
    return x


# ----------------------------------------------------------------------------
# Parameters (deterministic synthetic init; shapes follow the PyTorch module)
# ----------------------------------------------------------------------------
class ParamFactory:
    def __init__(self, seed=0):
        self._key = jax.random.PRNGKey(seed)
        self._n = 0

    def _next(self):
        self._n += 1
        return jax.random.fold_in(self._key, self._n)

    def conv(self, k, cin, cout):
        fan_in = k * k * k * cin
        w = jax.random.normal(self._next(), (k, k, k, cin, cout), jnp.float32)
        return (w * jnp.sqrt(2.0 / fan_in)).astype(jnp.bfloat16)

    def bias(self, cout):
        return 0.01 * jax.random.normal(self._next(), (cout,), jnp.float32)


def _make_resblock_params(pf, ch):
    return dict(
        g1=jnp.ones((ch,), jnp.float32), b1=jnp.zeros((ch,), jnp.float32),
        w1=pf.conv(3, ch, ch),
        g2=jnp.ones((ch,), jnp.float32), b2=jnp.zeros((ch,), jnp.float32),
        w2=pf.conv(3, ch, ch),
    )


def build_params(cfg, seed=0):
    pf = ParamFactory(seed)
    f = cfg["init_filters"]
    params = {"conv_init": pf.conv(3, cfg["in_channels"], f)}

    # encoder
    down = []
    for i, nblocks in enumerate(cfg["blocks_down"]):
        ch = f * (2 ** i)
        layer = {}
        if i > 0:
            layer["pre_w"] = pf.conv(3, ch // 2, ch)      # stride-2 downsample conv
        layer["blocks"] = [_make_resblock_params(pf, ch) for _ in range(nblocks)]
        down.append(layer)
    params["down"] = down

    # decoder
    n_up = len(cfg["blocks_up"])
    up_samples, up_layers = [], []
    for i in range(n_up):
        sic = f * (2 ** (n_up - i))
        up_samples.append({"w1x1": pf.conv(1, sic, sic // 2)})
        up_layers.append([_make_resblock_params(pf, sic // 2)
                          for _ in range(cfg["blocks_up"][i])])
    params["up_samples"] = up_samples
    params["up_layers"] = up_layers

    # ObjectDetectionHead(in=32, num_classes=5, intermediate=32, offset_intermediate=16, stride=1)
    # TODO(synk): exact head layer composition (norm/activation choice) of the original
    #             ObjectDetectionHead is not in the prompt; implemented as conv3x3+ReLU -> conv1x1,
    #             with the two 3x3x3 stems fused into one 32->48 conv (mathematically identical).
    nc = cfg["num_classes"]
    params["head"] = dict(
        stem_w=jnp.concatenate([pf.conv(3, f, 32), pf.conv(3, f, 16)], axis=-1),
        stem_b=jnp.concatenate([pf.bias(32), pf.bias(16)]),
        cls_w2=pf.conv(1, 32, nc), cls_b2=pf.bias(nc),
        off_w2=pf.conv(1, 16, 3), off_b2=pf.bias(3),
    )
    return params


# ----------------------------------------------------------------------------
# Model forward (inference path of SegResNetForObjectDetectionS1.forward)
# ----------------------------------------------------------------------------
def resblock(x, p):
    identity = x
    y = group_norm_relu(x, p["g1"], p["b1"], relu=True)
    y = conv3x3x3_s1(y, p["w1"])
    y = group_norm_relu(y, p["g2"], p["b2"], relu=True)
    y = conv3x3x3_s1(y, p["w2"])
    return y + identity


def segresnet_s1_forward(volume_ncdhw, params):
    # PyTorch input is NCDHW -> internal channels-last NDHWC, bf16 activations.
    x = jnp.transpose(volume_ncdhw, (0, 2, 3, 4, 1)).astype(jnp.bfloat16)

    # ---- SegResNetBackbone encoder ----
    x = conv3d_im2col(x, params["conv_init"])               # Cin=1 stem conv
    down_x = []
    for i, layer in enumerate(params["down"]):
        if i > 0:
            x = conv3d_im2col(x, layer["pre_w"], stride=2)  # stride-2 downsample
        for bp in layer["blocks"]:
            x = resblock(x, bp)
        down_x.append(x)
    down_x = down_x[::-1]

    # ---- SegResNetBackbone decoder (collects feature maps) ----
    feature_maps = []
    for i in range(len(params["up_samples"])):
        u = conv1x1(x, params["up_samples"][i]["w1x1"])     # 1x1x1 conv
        u = upsample2_trilinear(u)
        x = u + down_x[i + 1]
        for bp in params["up_layers"][i]:
            x = resblock(x, bp)
        feature_maps.append(x)
    # NOTE: backbone's conv_final segmentation output is discarded by
    # SegResNetForObjectDetectionS1.forward ("_", feature_maps), so it is not computed here.

    fm1 = feature_maps[-1]          # (N, D, H, W, 32) full resolution
    # Dropout3d(p=0.1) is identity at inference time.

    # ---- ObjectDetectionHead (fused 32->48 stem, then the two 1x1 convs) ----
    h = params["head"]
    t = conv3x3x3_s1(fm1, h["stem_w"], h["stem_b"], relu=True)
    logits = conv1x1(t[..., :32], h["cls_w2"], h["cls_b2"])
    offsets = conv1x1(t[..., 32:], h["off_w2"], h["off_b2"])

    # back to PyTorch NCDHW convention
    logits = jnp.transpose(logits, (0, 4, 1, 2, 3)).astype(jnp.float32)
    offsets = jnp.transpose(offsets, (0, 4, 1, 2, 3)).astype(jnp.float32)
    # forward returns ObjectDetectionOutput(logits=[logits], offsets=[offsets], strides=[1], loss=None)
    return [logits], [offsets], [HEAD_STRIDE]


# ----------------------------------------------------------------------------
if __name__ == "__main__":
    cfg = dict(spatial_dims=3, in_channels=1, out_channels=105, init_filters=32,
               blocks_down=(1, 2, 2, 4), blocks_up=(1, 1, 1),
               dropout_prob=0.1, num_classes=5)

    params = build_params(cfg, seed=0)

    key = jax.random.PRNGKey(0)
    # small but valid shape: batch=2, 1 input channel, 16^3 volume (NCDHW, like PyTorch)
    volume = jax.random.normal(key, (2, cfg["in_channels"], 16, 16, 16), jnp.float32)

    logits_list, offsets_list, strides = segresnet_s1_forward(volume, params)
    logits = jax.block_until_ready(logits_list[0])
    offsets = jax.block_until_ready(offsets_list[0])

    assert logits.shape == (2, cfg["num_classes"], 16, 16, 16), logits.shape
    assert offsets.shape == (2, 3, 16, 16, 16), offsets.shape
    assert strides == [1]
    assert bool(jnp.all(jnp.isfinite(logits))) and bool(jnp.all(jnp.isfinite(offsets)))
    print("KERNEL_OK")
</pallas_src>

<mosaic_0001>
module attributes {stable_mosaic.version = 11 : i64} {
  func.func @_mm_bias_kernel(%arg0: i32, %arg1: memref<256x27xbf16, #tpu.memory_space<vmem>>, %arg2: memref<27x32xbf16, #tpu.memory_space<vmem>>, %arg3: memref<1x32xf32, #tpu.memory_space<vmem>>, %arg4: memref<256x32xbf16, #tpu.memory_space<vmem>>) attributes {dimension_semantics = [#tpu.dimension_semantics<parallel>], iteration_bounds = array<i64: 32>, scalar_prefetch = 0 : i64, scratch_operands = 0 : i64, tpu.core_type = #tpu.core_type<tc>, window_params = [{transform_indices = @transform_0, window_bounds = array<i64: 256, 27>}, {pipeline_mode = #tpu.pipeline_mode<synchronous>, transform_indices = @transform_1, window_bounds = array<i64: 27, 32>}, {pipeline_mode = #tpu.pipeline_mode<synchronous>, transform_indices = @transform_2, window_bounds = array<i64: 1, 32>}, {transform_indices = @transform_3, window_bounds = array<i64: 256, 32>}]} {
    %c0 = arith.constant 0 : index
    %c0_0 = arith.constant 0 : index
    %0 = vector.load %arg1[%c0, %c0_0] : memref<256x27xbf16, #tpu.memory_space<vmem>>, vector<256x27xbf16>
    %c0_1 = arith.constant 0 : index
    %c0_2 = arith.constant 0 : index
    %1 = vector.load %arg2[%c0_1, %c0_2] : memref<27x32xbf16, #tpu.memory_space<vmem>>, vector<27x32xbf16>
    %cst = arith.constant dense<0.000000e+00> : vector<256x32xf32>
    %2 = tpu.matmul %0, %1, %cst {dimension_numbers = #tpu.dot_dimension_numbers<[1], [0], [0], [1], [0, 0, 1, 1], [], []>} : vector<256x27xbf16>, vector<27x32xbf16>, vector<256x32xf32> -> vector<256x32xf32>
    %c0_3 = arith.constant 0 : index
    %c0_4 = arith.constant 0 : index
    %3 = vector.load %arg3[%c0_3, %c0_4] : memref<1x32xf32, #tpu.memory_space<vmem>>, vector<1x32xf32>
    %4 = vector.broadcast %3 : vector<1x32xf32> to vector<256x32xf32>
    %5 = arith.addf %2, %4 : vector<256x32xf32>
    %6 = arith.truncf %5 : vector<256x32xf32> to vector<256x32xbf16>
    %c0_5 = arith.constant 0 : index
    %c0_6 = arith.constant 0 : index
    %7 = vector.load %arg4[%c0_5, %c0_6] : memref<256x32xbf16, #tpu.memory_space<vmem>>, vector<256x32xbf16>
    tpu.vector_store %arg4[%c0_5, %c0_6], %6 {strides = array<i32>} : memref<256x32xbf16, #tpu.memory_space<vmem>>, vector<256x32xbf16>,
    return
  }
  func.func @transform_0(%arg0: i32) -> (i32, i32) {
    %c0_i32 = arith.constant 0 : i32
    %c0_i32_0 = arith.constant 0 : i32
    return %arg0, %c0_i32 : i32, i32
  }
  func.func @transform_1(%arg0: i32) -> (i32, i32) {
    %c0_i32 = arith.constant 0 : i32
    %c0_i32_0 = arith.constant 0 : i32
    %c0_i32_1 = arith.constant 0 : i32
    return %c0_i32, %c0_i32_0 : i32, i32
  }
  func.func @transform_2(%arg0: i32) -> (i32, i32) {
    %c0_i32 = arith.constant 0 : i32
    %c0_i32_0 = arith.constant 0 : i32
    %c0_i32_1 = arith.constant 0 : i32
    return %c0_i32, %c0_i32_0 : i32, i32
  }
  func.func @transform_3(%arg0: i32) -> (i32, i32) {
    %c0_i32 = arith.constant 0 : i32
    %c0_i32_0 = arith.constant 0 : i32
    return %arg0, %c0_i32 : i32, i32
  }
}

</mosaic_0001>

<bundles_post_ra>
// kernel: conv3d_im2col.1
= control target key start
LH: loop header
LB: loop body
LE: loop exit
PB: predicated region body
PF: predicated region fallthrough
CT: control target
= control target key end

     0   :  { %8 = vsyncpa [#allocation3], 0  ;;  %s1082_s0 = inlined_call_operand.vmem [shape: bf16[8192,27], index: 0, kind: input, shape index: {}]   ;;  %s1083_s1 = inlined_call_operand.vmem [shape: bf16[27,32], index: 1, kind: input, shape index: {}]   ;;  %s1084_s2 = inlined_call_operand.vmem [shape: f32[1,32], index: 2, kind: input, shape index: {}]   ;;  %s1085_s3 = inlined_call_operand.hbm [shape: bf16[8192,32], index: 3, kind: output, shape index: {}]  }
   0x1   :  { %10 = vsyncpa [#allocation3 + $0x1], 0  ;;  %s847_s12 = smov 0   ;;  %s849_s13 = smov 0  }
   0x2   :  { %s851_s14 = smov 0   ;;  %s853_s15 = smov 0  }
   0x3 LB: > { %s868_s16 = sadd.s32 4294967295, %s822_s15   ;;  %s592_s17 = sadd.s32 4294967294, %s822_s15   ;;  %s822_s15 = sphi %s853_s15, %s1091_s15   ;;  %s818_s14 = sphi %s851_s14, %s1090_s14   ;;  %s814_s13 = sphi %s849_s13, %s1089_s13   ;;  %s810_s12 = sphi %s847_s12, %s1088_s12  }
   0x4   : > { %s872_s18 = sadd.s32 1, %s822_s15   ;;  %s91_s19 = sadd.s32 1, %s818_s14 }
   0x5   : > { %s88_s20 = ssub.s32 %s822_s15, %s872_s18  ;;  %p101_p0 = scmp.ne.s32.totalorder %s818_s14, %s814_s13 }
   0x6   : > { %p89_p1 = scmp.eq.s32.totalorder %s88_s20, 0  ;;  %p102_p2 = scmp.eq.s32.totalorder %s868_s16, 31 }
   0x7   : > { %p107_p3 = scmp.ne.s32.totalorder %s814_s13, %s810_s12  ;;  %p108_p4 = scmp.eq.s32.totalorder %s592_s17, 31 }
   0x8   : > { %s883_s21 = scalar_select %p89_p1, %s818_s14, %s91_s19  }
   0x9   : > { %p885_p5 = por %p102_p2, %p101_p0  ;;  %p889_p6 = por %p108_p4, %p107_p3 }
   0xa   : > { %p595_p7 = scmp.ge.s32.totalorder %s822_s15, 1  ;;  %p141_p8 = scmp.lt.s32.totalorder %s822_s15, 33 }
   0xc   : > { %p142_p9 = pnand %p595_p7, %p141_p8 }
   0xd   : > { %s597_s28 = sshll.u32 (!%p142_p9), %s868_s16, 5  ;;  %s162_s8 = sand.u32 (!%p142_p9), 1, %s814_s13  }
   0xe   : > { %145 = sbr.rel (%p142_p9) target bundleno = 230 (0xe6), region = 32  ;;  %p166_p10 = scmp.lt.s32.totalorder (!%p142_p9), %s597_s28, 1023 }
   0xf   : > { %s596_s11 = sshll.u32 (!%p142_p9), %s162_s8, 7  ;;  %s710_s19 = sshll.u32 (!%p142_p9), %s868_s16, 7 }
  0x10   : > { %s952_s17 = scalar_lea.vmem (!%p142_p9), [#allocation2], %s596_s11  ;;  %s526_s25 = scalar_lea.hbm (!%p142_p9), %s1085_s3, %s710_s19 }
  0x11   : > { %s527_s16 = sshll.u32 (!%p142_p9), %s952_s17, 4  ;;  %s529_s26 = sshll.u32 (!%p142_p9), %s526_s25, 4  ;;  %s528_s16 = int_to_ptr.vmem [resolvable:$true] %s527_s16  ;;  %s530_s26 = int_to_ptr.hbm [resolvable:$true] %s529_s26 }
  0x12   : > { %s515_s27 = scalar_lea.sflag (!%p142_p9), [#allocation3], %s162_s8  ;;  %s780_s5 = scalar_lea.hbm (!%p142_p9), %s1085_s3, 4096 }
  0x13   : > { %v669_v0 = vld [vmem:[%s1083_s1 + $0x8] sm:$0xf]  ;;  %v709_v1 = vld [vmem:[%s1083_s1 + $0x8] sm:$0x30]  ;;  %vm353_vm0 = vcmask 1044480   ;;  %vm354_vm1 = vcmask 1045504  }
  0x14   : > { %v670_v2 = vor.u32 %v709_v1, %v669_v0  ;;  %v824_v3 = vmov 65535   ;;  %s1093_s28 = smov (!%p166_p10, %s597_s28), 1023  ;;  %v708_v7 = vld [vmem:[%s1083_s1] sm:$0xff]  ;;  %vm304_vm2 = vcmask 220160   ;;  %vm481_vm3 = vcmask 257024  }
  0x15   : > { %v355_v4 = vsel %vm353_vm0, 4294967295, %v824_v3  ;;  %s598_s4 = sshll.u32 %s1093_s28, 2  ;;  %v946_v24 = vld [vmem:[%s1084_s2] ss:$0 sm:$0xff]  ;;  %s774_s28 = sshra.s32 %s530_s26, 4  ;;  %s775_s28 = int_to_ptr.hbm [resolvable:$true] %s774_s28 }
  0x16   : > { %v356_v5 = vsel %vm354_vm1, %v355_v4, 0  ;;  %s908_s7 = scalar_lea.vmem %s1082_s0, %s598_s4  ;;  %s776_s29 = scalar_lea.hbm %s775_s28, 128 }
  0x17   : > { %v358_v6 = vand.u32 %v670_v2, %v356_v5  ;;  %v692_v8 = vld [vmem:[%s908_s7] sm:$0xff]  ;;  %v693_v12 = vld [vmem:[%s908_s7 + $0x8] sm:$0xff]  ;;  %v694_v16 = vld [vmem:[%s908_s7 + $0x10] sm:$0xff]  ;;  %p777_p11 = scmp.ne.s32.totalorder %s775_s28, %s776_s29  ;;  %p781_p0 = scmp.lt.s32.totalorder %s775_s28, %s1085_s3 }
  0x18   : > { %v696_v9 = vld [vmem:[%s908_s7 + $0x20] sm:$0xff]  ;;  %v697_v13 = vld [vmem:[%s908_s7 + $0x28] sm:$0xff]  ;;  %v698_v17 = vld [vmem:[%s908_s7 + $0x30] sm:$0xff]  ;;  %p782_p1 = scmp.lt.s32.totalorder %s780_s5, %s776_s29 }
  0x19   : > { %366 = vmatpush.bf16.msra.mxu0 %v358_v6  ;;  %711 = vmatpush.bf16.msra.mxu1 %v358_v6  ;;  %v700_v10 = vld [vmem:[%s908_s7 + $0x40] sm:$0xff]  ;;  %v701_v14 = vld [vmem:[%s908_s7 + $0x48] sm:$0xff]  ;;  %v702_v18 = vld [vmem:[%s908_s7 + $0x50] sm:$0xff]  ;;  %p778_p12 = pnand %p777_p11, %p885_p5 }
  0x1a   : > { %712 = vmatpush.bf16.msra.mxu2 %v358_v6  ;;  %713 = vmatpush.bf16.msra.mxu3 %v358_v6  ;;  %v704_v11 = vld [vmem:[%s908_s7 + $0x60] sm:$0xff]  ;;  %v705_v15 = vld [vmem:[%s908_s7 + $0x68] sm:$0xff]  ;;  %v706_v19 = vld [vmem:[%s908_s7 + $0x70] sm:$0xff]  ;;  %p783_p2 = por %p782_p1, %p781_p0 }
  0x1b   : > { %v695_v20 = vld [vmem:[%s908_s7 + $0x18] sm:$0xff]  ;;  %p779_p13 = pneg %p778_p12 }
  0x1c   : > { %v699_v21 = vld [vmem:[%s908_s7 + $0x38] sm:$0xff] }
  0x1d   : > { %367 = vmatpush.bf16.msra.mxu0 %v708_v7  ;;  %714 = vmatpush.bf16.msra.mxu1 %v708_v7  ;;  %v703_v22 = vld [vmem:[%s908_s7 + $0x58] sm:$0xff]  ;;  %p784_p3 = pnand %p783_p2, %p779_p13 }
  0x1e   : > { %715 = vmatpush.bf16.msra.mxu2 %v708_v7  ;;  %716 = vmatpush.bf16.msra.mxu3 %v708_v7  ;;  %v707_v23 = vld [vmem:[%s908_s7 + $0x78] sm:$0xff] }
  0x20   : > { %671 = vmatmul.msk.bf16.vlgmr.msra.gmra.mxu0 %vm304_vm2, %v692_v8  ;;  %675 = vmatmul.msk.bf16.vlgmr.msra.gmra.mxu1 %vm304_vm2, %v696_v9 }
  0x21   : > { %679 = vmatmul.msk.bf16.vlgmr.msra.gmra.mxu2 %vm304_vm2, %v700_v10  ;;  %683 = vmatmul.msk.bf16.vlgmr.msra.gmra.mxu3 %vm304_vm2, %v704_v11 }
  0x30   : > { %672 = vmatmul.msk.bf16.gmra.mxu0 %vm304_vm2, %v693_v12  ;;  %676 = vmatmul.msk.bf16.gmra.mxu1 %vm304_vm2, %v697_v13 }
  0x31   : > { %680 = vmatmul.msk.bf16.gmra.mxu2 %vm304_vm2, %v701_v14  ;;  %684 = vmatmul.msk.bf16.gmra.mxu3 %vm304_vm2, %v705_v15 }
  0x40   : > { %673 = vmatmul.msk.bf16.gmra.mxu0 %vm304_vm2, %v694_v16  ;;  %677 = vmatmul.msk.bf16.gmra.mxu1 %vm304_vm2, %v698_v17 }
  0x41   : > { %681 = vmatmul.msk.bf16.gmra.mxu2 %vm304_vm2, %v702_v18  ;;  %685 = vmatmul.msk.bf16.gmra.mxu3 %vm304_vm2, %v706_v19 }
  0x50   : > { %674 = vmatmul.msk.bf16.gmra.mxu0 %vm304_vm2, %v695_v20  ;;  %678 = vmatmul.msk.bf16.gmra.mxu1 %vm304_vm2, %v699_v21 }
  0x51   : > { %682 = vmatmul.msk.bf16.gmra.mxu2 %vm304_vm2, %v703_v22  ;;  %686 = vmatmul.msk.bf16.gmra.mxu3 %vm304_vm2, %v707_v23 }
  0x9d   : > { %v369_v25 = vpop.f32.mrf.mxu0  ;;  %v389_v26 = vpop.f32.mrf.mxu1 }
  0x9e   : > { %v370_v27 = vadd.f32 %v946_v24, %v369_v25  ;;  %v390_v28 = vadd.f32 %v946_v24, %v389_v26 }
  0xa0   : > { %v449_v29 = vpack.c.bf16 %v370_v27, %v370_v27  ;;  %v457_v30 = vpack.c.bf16 %v390_v28, %v390_v28 }
  0xa2   : > { %482 = vst.msk [vmem:[%s952_s17] sm:$0xf] %vm481_vm3, %v449_v29 }
  0xa3   : > { %490 = vst.msk [vmem:[%s952_s17 + $0x20] sm:$0xf] %vm481_vm3, %v457_v30 }
  0xa4   : > { %v409_v31 = vpop.f32.mrf.mxu2  ;;  %v429_v32 = vpop.f32.mrf.mxu3 }
  0xa5   : > { %v410_v33 = vadd.f32 %v946_v24, %v409_v31  ;;  %v430_v34 = vadd.f32 %v946_v24, %v429_v32  ;;  %v371_v35 = vpop.f32.mrf.mxu0  ;;  %v391_v36 = vpop.f32.mrf.mxu1 }
  0xa6   : > { %v372_v37 = vadd.f32 %v946_v24, %v371_v35  ;;  %v392_v38 = vadd.f32 %v946_v24, %v391_v36 }
  0xa7   : > { %v465_v39 = vpack.c.bf16 %v410_v33, %v410_v33  ;;  %v473_v40 = vpack.c.bf16 %v430_v34, %v430_v34 }
  0xa8   : > { %v450_v41 = vpack.c.bf16 %v372_v37, %v372_v37  ;;  %v458_v42 = vpack.c.bf16 %v392_v38, %v392_v38 }
  0xa9   : > { %498 = vst.msk [vmem:[%s952_s17 + $0x40] sm:$0xf] %vm481_vm3, %v465_v39 }
  0xaa   : > { %506 = vst.msk [vmem:[%s952_s17 + $0x60] sm:$0xf] %vm481_vm3, %v473_v40 }
  0xab   : > { %483 = vst.msk [vmem:[%s952_s17 + $0x4] sm:$0xf] %vm481_vm3, %v450_v41 }
  0xac   : > { %491 = vst.msk [vmem:[%s952_s17 + $0x24] sm:$0xf] %vm481_vm3, %v458_v42  ;;  %v411_v43 = vpop.f32.mrf.mxu2  ;;  %v431_v44 = vpop.f32.mrf.mxu3 }
  0xad   : > { %v412_v45 = vadd.f32 %v946_v24, %v411_v43  ;;  %v432_v46 = vadd.f32 %v946_v24, %v431_v44  ;;  %v374_v47 = vpop.f32.mrf.mxu0  ;;  %v394_v48 = vpop.f32.mrf.mxu1 }
  0xae   : > { %v375_v49 = vadd.f32 %v946_v24, %v374_v47  ;;  %v395_v50 = vadd.f32 %v946_v24, %v394_v48 }
  0xaf   : > { %v466_v51 = vpack.c.bf16 %v412_v45, %v412_v45  ;;  %v474_v52 = vpack.c.bf16 %v432_v46, %v432_v46 }
  0xb0   : > { %v451_v53 = vpack.c.bf16 %v375_v49, %v375_v49  ;;  %v459_v54 = vpack.c.bf16 %v395_v50, %v395_v50 }
  0xb1   : > { %499 = vst.msk [vmem:[%s952_s17 + $0x44] sm:$0xf] %vm481_vm3, %v466_v51 }
  0xb2   : > { %507 = vst.msk [vmem:[%s952_s17 + $0x64] sm:$0xf] %vm481_vm3, %v474_v52 }
  0xb3   : > { %484 = vst.msk [vmem:[%s952_s17 + $0x8] sm:$0xf] %vm481_vm3, %v451_v53 }
  0xb4   : > { %492 = vst.msk [vmem:[%s952_s17 + $0x28] sm:$0xf] %vm481_vm3, %v459_v54  ;;  %v414_v55 = vpop.f32.mrf.mxu2  ;;  %v434_v56 = vpop.f32.mrf.mxu3 }
  0xb5   : > { %v415_v57 = vadd.f32 %v946_v24, %v414_v55  ;;  %v435_v58 = vadd.f32 %v946_v24, %v434_v56  ;;  %v376_v59 = vpop.f32.mrf.mxu0  ;;  %v396_v60 = vpop.f32.mrf.mxu1 }
  0xb6   : > { %v377_v61 = vadd.f32 %v946_v24, %v376_v59  ;;  %v397_v62 = vadd.f32 %v946_v24, %v396_v60 }
  0xb7   : > { %v467_v63 = vpack.c.bf16 %v415_v57, %v415_v57  ;;  %v475_v0 = vpack.c.bf16 %v435_v58, %v435_v58 }
  0xb8   : > { %v452_v1 = vpack.c.bf16 %v377_v61, %v377_v61  ;;  %v460_v2 = vpack.c.bf16 %v397_v62, %v397_v62 }
  0xb9   : > { %500 = vst.msk [vmem:[%s952_s17 + $0x48] sm:$0xf] %vm481_vm3, %v467_v63 }
  0xba   : > { %508 = vst.msk [vmem:[%s952_s17 + $0x68] sm:$0xf] %vm481_vm3, %v475_v0 }
  0xbb   : > { %485 = vst.msk [vmem:[%s952_s17 + $0xc] sm:$0xf] %vm481_vm3, %v452_v1 }
  0xbc   : > { %493 = vst.msk [vmem:[%s952_s17 + $0x2c] sm:$0xf] %vm481_vm3, %v460_v2  ;;  %v416_v3 = vpop.f32.mrf.mxu2  ;;  %v436_v4 = vpop.f32.mrf.mxu3 }
  0xbd   : > { %v417_v5 = vadd.f32 %v946_v24, %v416_v3  ;;  %v437_v6 = vadd.f32 %v946_v24, %v436_v4  ;;  %v379_v7 = vpop.f32.mrf.mxu0  ;;  %v399_v8 = vpop.f32.mrf.mxu1 }
  0xbe   : > { %v380_v9 = vadd.f32 %v946_v24, %v379_v7  ;;  %v400_v10 = vadd.f32 %v946_v24, %v399_v8 }
  0xbf   : > { %v468_v11 = vpack.c.bf16 %v417_v5, %v417_v5  ;;  %v476_v12 = vpack.c.bf16 %v437_v6, %v437_v6 }
  0xc0   : > { %v453_v13 = vpack.c.bf16 %v380_v9, %v380_v9  ;;  %v461_v14 = vpack.c.bf16 %v400_v10, %v400_v10 }
  0xc1   : > { %501 = vst.msk [vmem:[%s952_s17 + $0x4c] sm:$0xf] %vm481_vm3, %v468_v11 }
  0xc2   : > { %509 = vst.msk [vmem:[%s952_s17 + $0x6c] sm:$0xf] %vm481_vm3, %v476_v12 }
  0xc3   : > { %486 = vst.msk [vmem:[%s952_s17 + $0x10] sm:$0xf] %vm481_vm3, %v453_v13 }
  0xc4   : > { %494 = vst.msk [vmem:[%s952_s17 + $0x30] sm:$0xf] %vm481_vm3, %v461_v14  ;;  %v419_v15 = vpop.f32.mrf.mxu2  ;;  %v439_v16 = vpop.f32.mrf.mxu3 }
  0xc5   : > { %v420_v17 = vadd.f32 %v946_v24, %v419_v15  ;;  %v440_v18 = vadd.f32 %v946_v24, %v439_v16  ;;  %v381_v19 = vpop.f32.mrf.mxu0  ;;  %v401_v20 = vpop.f32.mrf.mxu1 }
  0xc6   : > { %v382_v21 = vadd.f32 %v946_v24, %v381_v19  ;;  %v402_v22 = vadd.f32 %v946_v24, %v401_v20 }
  0xc7   : > { %v469_v23 = vpack.c.bf16 %v420_v17, %v420_v17  ;;  %v477_v25 = vpack.c.bf16 %v440_v18, %v440_v18 }
  0xc8   : > { %v454_v26 = vpack.c.bf16 %v382_v21, %v382_v21  ;;  %v462_v27 = vpack.c.bf16 %v402_v22, %v402_v22 }
  0xc9   : > { %502 = vst.msk [vmem:[%s952_s17 + $0x50] sm:$0xf] %vm481_vm3, %v469_v23 }
  0xca   : > { %510 = vst.msk [vmem:[%s952_s17 + $0x70] sm:$0xf] %vm481_vm3, %v477_v25 }
  0xcb   : > { %487 = vst.msk [vmem:[%s952_s17 + $0x14] sm:$0xf] %vm481_vm3, %v454_v26 }
  0xcc   : > { %495 = vst.msk [vmem:[%s952_s17 + $0x34] sm:$0xf] %vm481_vm3, %v462_v27  ;;  %v421_v28 = vpop.f32.mrf.mxu2  ;;  %v441_v29 = vpop.f32.mrf.mxu3 }
  0xcd   : > { %v422_v30 = vadd.f32 %v946_v24, %v421_v28  ;;  %v442_v31 = vadd.f32 %v946_v24, %v441_v29  ;;  %v384_v32 = vpop.f32.mrf.mxu0  ;;  %v404_v33 = vpop.f32.mrf.mxu1 }
  0xce   : > { %v385_v34 = vadd.f32 %v946_v24, %v384_v32  ;;  %v405_v35 = vadd.f32 %v946_v24, %v404_v33 }
  0xcf   : > { %v470_v36 = vpack.c.bf16 %v422_v30, %v422_v30  ;;  %v478_v37 = vpack.c.bf16 %v442_v31, %v442_v31 }
  0xd0   : > { %v455_v38 = vpack.c.bf16 %v385_v34, %v385_v34  ;;  %v463_v39 = vpack.c.bf16 %v405_v35, %v405_v35 }
  0xd1   : > { %503 = vst.msk [vmem:[%s952_s17 + $0x54] sm:$0xf] %vm481_vm3, %v470_v36 }
  0xd2   : > { %511 = vst.msk [vmem:[%s952_s17 + $0x74] sm:$0xf] %vm481_vm3, %v478_v37 }
  0xd3   : > { %488 = vst.msk [vmem:[%s952_s17 + $0x18] sm:$0xf] %vm481_vm3, %v455_v38 }
  0xd4   : > { %496 = vst.msk [vmem:[%s952_s17 + $0x38] sm:$0xf] %vm481_vm3, %v463_v39  ;;  %v424_v40 = vpop.f32.mrf.mxu2  ;;  %v444_v41 = vpop.f32.mrf.mxu3 }
  0xd5   : > { %v425_v42 = vadd.f32 %v946_v24, %v424_v40  ;;  %v445_v43 = vadd.f32 %v946_v24, %v444_v41  ;;  %v386_v44 = vpop.f32.mrf.mxu0  ;;  %v406_v45 = vpop.f32.mrf.mxu1 }
  0xd6   : > { %v387_v46 = vadd.f32 %v946_v24, %v386_v44  ;;  %v407_v47 = vadd.f32 %v946_v24, %v406_v45 }
  0xd7   : > { %v471_v48 = vpack.c.bf16 %v425_v42, %v425_v42  ;;  %v479_v49 = vpack.c.bf16 %v445_v43, %v445_v43 }
  0xd8   : > { %v456_v50 = vpack.c.bf16 %v387_v46, %v387_v46  ;;  %v464_v51 = vpack.c.bf16 %v407_v47, %v407_v47 }
  0xd9   : > { %504 = vst.msk [vmem:[%s952_s17 + $0x58] sm:$0xf] %vm481_vm3, %v471_v48 }
  0xda   : > { %512 = vst.msk [vmem:[%s952_s17 + $0x78] sm:$0xf] %vm481_vm3, %v479_v49 }
  0xdb   : > { %489 = vst.msk [vmem:[%s952_s17 + $0x1c] sm:$0xf] %vm481_vm3, %v456_v50 }
  0xdc   : > { %497 = vst.msk [vmem:[%s952_s17 + $0x3c] sm:$0xf] %vm481_vm3, %v464_v51  ;;  %v426_v52 = vpop.f32.mrf.mxu2  ;;  %v446_v53 = vpop.f32.mrf.mxu3 }
  0xdd   : > { %v427_v54 = vadd.f32 %v946_v24, %v426_v52  ;;  %v447_v55 = vadd.f32 %v946_v24, %v446_v53 }
  0xdf   : > { %v472_v56 = vpack.c.bf16 %v427_v54, %v427_v54  ;;  %v480_v57 = vpack.c.bf16 %v447_v55, %v447_v55 }
  0xe1   : > { %505 = vst.msk [vmem:[%s952_s17 + $0x5c] sm:$0xf] %vm481_vm3, %v472_v56 }
  0xe2   : > { %513 = vst.msk [vmem:[%s952_s17 + $0x7c] sm:$0xf] %vm481_vm3, %v480_v57 }
  0xe3   : > { %787 = shalt.err (!%p784_p3)
}
  0xe4   : > { %s825_s8 = smov 64   ;;  %s826_s9 = smov 4  }
  0xe5   : > { %717 = dma.vmem_to_hbm [thread:$0]  (%p885_p5), %s528_s16, 2048, %s530_s26, %s515_s27, %s825_s8, %s825_s8, %s826_s9  }
  0xe6 PF: > { %p723_p4 = scmp.ge.s32.totalorder %s822_s15, 2  ;;  %s544_s10 = sand.u32 1, %s810_s12  }
  0xe7   : > { %s545_s11 = scalar_lea.sflag [#allocation3], %s544_s10 }
  0xe8   : > { %p720_p7 = pnand %p723_p4, %p889_p6 }
  0xea   : > { %p721_p8 = pneg %p720_p7 }
  0xec   : > { %805 = dma.done.wait (%p721_p8), %s545_s11, 2048  }
  0xed   : > { %807 = vsyncadd (%p721_p8), %s545_s11, 4294965248  ;;  %p13_p9 = scmp.ge.s32.totalorder %s872_s18, 34   ;;  %s1088_s12 = smov %s814_s13 }
  0xee   : > { %s1089_s13 = smov %s818_s14  ;;  %s1090_s14 = smov %s883_s21 }
  0xef   : > { %s1091_s15 = smov %s872_s18  ;;  %15 = sbr.rel (!%p13_p9) target bundleno = 3 (0x3), region = 67 }
  0xf4   :  { %551 = vsyncpa [#allocation3], 1 }
  0xf5   :  { %553 = vsyncpa [#allocation3 + $0x1], 1 }

</bundles_post_ra>
